<compile_context>
chip_gen: v6e
topology: v6e:2x2x1
jax: 0.10.0
libtpu: 0.0.40
codegen_flags: <defaults>
</compile_context>

<pallas_src>
import functools
import math

import jax
import jax.numpy as jnp
from jax.experimental import pallas as pl
from jax.experimental.pallas import tpu as pltpu


def _selection_matrix(H, W, dtype):
    """S[i, j] = 1 iff flat index i == 2*(j // Wp)*W + 2*(j % Wp).

    (x_flat @ S) == x[::2, ::2] flattened; handles odd H/W like PyTorch ::2.
    """
    Hp, Wp = (H + 1) // 2, (W + 1) // 2
    i = jnp.arange(H * W, dtype=jnp.int32)[:, None]
    j = jnp.arange(Hp * Wp, dtype=jnp.int32)[None, :]
    src = 2 * (j // Wp) * W + 2 * (j % Wp)
    return (i == src).astype(dtype)


def lambda_shortcut_kernel(x_ref, s_ref, o_ref, *, block_n, C, C_out, pad_lo):
    # x_ref: (block_n*C, HW)   s_ref: (HW, HWp)   o_ref: (block_n*C_out, HWp)
    HWp = o_ref.shape[-1]

    # One fused MXU matmul gathers the strided pixels for every (sample,
    # channel) row of this block at once.  HIGHEST keeps the 0/1 gather exact
    # for f32 operands.
    y = jnp.dot(
        x_ref[...],
        s_ref[...],
        preferred_element_type=jnp.float32,
        precision=jax.lax.Precision.HIGHEST,
    ).astype(o_ref.dtype)                                # (block_n*C, HWp)

    # Assemble the full output tile (zero pad bands around the gathered band)
    # and write it with a single unmasked full-tile store.
    pad_hi = C_out - C - pad_lo
    y3 = y.reshape(block_n, C, HWp)
    parts = []
    if pad_lo:
        parts.append(jnp.zeros((block_n, pad_lo, HWp), o_ref.dtype))
    parts.append(y3)
    if pad_hi:
        parts.append(jnp.zeros((block_n, pad_hi, HWp), o_ref.dtype))
    out = jnp.concatenate(parts, axis=1) if len(parts) > 1 else y3
    o_ref[...] = out.reshape(block_n * C_out, HWp)


def _row_align(C, C_out):
    """Smallest block_n multiple making block_n*C and block_n*C_out 8-aligned."""
    a = 8 // math.gcd(C, 8)
    b = 8 // math.gcd(C_out, 8)
    return a * b // math.gcd(a, b)


def _choose_block_n(N, C, C_out, HW, itemsize, target_bytes=4 << 20):
    """Samples per grid step: ~4 MiB input blocks, >= 2 grid steps when the
    batch allows, sublane(8)-aligned fused row blocks."""
    per_sample_in = max(1, C * HW * itemsize)
    bn = max(1, min(N, target_bytes // per_sample_in))
    # Prefer >= 2 grid steps so both v7x TensorCores get work / pipelining.
    bn = min(bn, max(1, (N + 1) // 2))
    if bn >= N:
        return N  # one block spanning the whole array is always layout-legal
    m = _row_align(C, C_out)
    bn = (bn // m) * m
    if bn == 0:
        bn = min(N, m)
    return min(bn, N)


def lambda_layer(x, planes, *, block_n=None):
    """JAX/Pallas equivalent of:
       F.pad(x[:, :, ::2, ::2], (0,0,0,0, planes//4, planes//4), 'constant', 0)
    """
    # TODO(synk): LambdaLayer wraps an arbitrary callable; only the concrete
    # ResNet option-A shortcut lambda is implemented here.
    N, C, H, W = x.shape
    pad = planes // 4
    C_out = C + 2 * pad
    Hp, Wp = (H + 1) // 2, (W + 1) // 2
    HW, HWp = H * W, Hp * Wp

    orig_dtype = x.dtype
    if not jnp.issubdtype(orig_dtype, jnp.floating):
        # TODO(synk): integer inputs are routed through the f32 MXU path
        # (exact only for |x| < 2^24; v7x has no integer MXU at all).
        x = x.astype(jnp.float32)

    S = _selection_matrix(H, W, x.dtype)

    if block_n is None:
        block_n = _choose_block_n(N, C, C_out, HW, x.dtype.itemsize)
    grid_n = pl.cdiv(N, block_n)

    rows_in = block_n * C
    rows_out = block_n * C_out
    x_flat = x.reshape(N * C, HW)  # free row-major HBM reshape

    # VMEM budget: double-buffered in/out blocks + 2x S buffers + margin.
    # Requested explicitly so larger blocks fit under v5e's 16 MiB scoped
    # default while staying within v7x's 64 MiB physical VMEM.
    itemsize = x.dtype.itemsize
    need = (2 * (rows_in * HW + rows_out * HWp) * itemsize
            + 2 * HW * HWp * S.dtype.itemsize)
    vmem_limit = int(min(max(need + (4 << 20), 16 << 20), 32 << 20))

    kernel = functools.partial(
        lambda_shortcut_kernel, block_n=block_n, C=C, C_out=C_out, pad_lo=pad)

    out_flat = pl.pallas_call(
        kernel,
        out_shape=jax.ShapeDtypeStruct((N * C_out, HWp), x.dtype),
        grid=(grid_n,),
        in_specs=[
            pl.BlockSpec((rows_in, HW), lambda i: (i, 0)),
            # Constant index_map -> selection matrix fetched once, reused.
            pl.BlockSpec((HW, HWp), lambda i: (0, 0)),
        ],
        out_specs=pl.BlockSpec((rows_out, HWp), lambda i: (i, 0)),
        compiler_params=pltpu.CompilerParams(
            dimension_semantics=("parallel",),
            vmem_limit_bytes=vmem_limit,
        ),
    )(x_flat, S)

    out = out_flat.reshape(N, C_out, Hp, Wp)
    if out.dtype != orig_dtype:
        out = out.astype(orig_dtype)
    return out


if __name__ == "__main__":
    key = jax.random.PRNGKey(0)
    # Small shapes consistent with the CIFAR ResNet shortcut usage.
    N, C, H, W = 2, 4, 16, 16
    planes = 8  # pads planes//4 = 2 zero channels on each side -> 8 out channels
    x = jax.random.normal(key, (N, C, H, W), dtype=jnp.float32)

    fn = jax.jit(functools.partial(lambda_layer, planes=planes))
    out = jax.block_until_ready(fn(x))

    # Pure-JAX reference of the PyTorch lambda.
    ref = jnp.pad(
        x[:, :, ::2, ::2],
        ((0, 0), (planes // 4, planes // 4), (0, 0), (0, 0)),
        mode="constant",
    )
    assert out.shape == ref.shape, (out.shape, ref.shape)
    assert out.dtype == ref.dtype, (out.dtype, ref.dtype)
    assert jnp.allclose(out, ref, atol=1e-6, rtol=1e-6), "mismatch vs reference"

    print("KERNEL_OK")
</pallas_src>

<mosaic_0001>
module attributes {stable_mosaic.version = 11 : i64} {
  func.func @lambda_shortcut_kernel(%arg0: i32, %arg1: memref<8x256xf32, #tpu.memory_space<vmem>>, %arg2: memref<256x64xf32, #tpu.memory_space<vmem>>, %arg3: memref<16x64xf32, #tpu.memory_space<vmem>>) attributes {dimension_semantics = [#tpu.dimension_semantics<parallel>], iteration_bounds = array<i64: 1>, scalar_prefetch = 0 : i64, scratch_operands = 0 : i64, tpu.core_type = #tpu.core_type<tc>, window_params = [{transform_indices = @transform_0, window_bounds = array<i64: 8, 256>}, {pipeline_mode = #tpu.pipeline_mode<synchronous>, transform_indices = @transform_1, window_bounds = array<i64: 256, 64>}, {transform_indices = @transform_2, window_bounds = array<i64: 16, 64>}]} {
    %c0 = arith.constant 0 : index
    %c0_0 = arith.constant 0 : index
    %0 = vector.load %arg1[%c0, %c0_0] : memref<8x256xf32, #tpu.memory_space<vmem>>, vector<8x256xf32>
    %c0_1 = arith.constant 0 : index
    %c0_2 = arith.constant 0 : index
    %1 = vector.load %arg2[%c0_1, %c0_2] : memref<256x64xf32, #tpu.memory_space<vmem>>, vector<256x64xf32>
    %cst = arith.constant dense<0.000000e+00> : vector<8x64xf32>
    %2 = tpu.matmul %0, %1, %cst {dimension_numbers = #tpu.dot_dimension_numbers<[1], [0], [0], [1], [0, 0, 1, 1], [], []>, precision = #tpu.contract_precision<fp32>} : vector<8x256xf32>, vector<256x64xf32>, vector<8x64xf32> -> vector<8x64xf32>
    %3 = vector.shape_cast %2 : vector<8x64xf32> to vector<2x4x64xf32>
    %cst_3 = arith.constant 0.000000e+00 : f32
    %4 = vector.broadcast %cst_3 : f32 to vector<2x2x64xf32>
    %cst_4 = arith.constant 0.000000e+00 : f32
    %5 = vector.broadcast %cst_4 : f32 to vector<2x2x64xf32>
    %6 = tpu.concatenate %4, %3, %5 in 1 : vector<2x2x64xf32>, vector<2x4x64xf32>, vector<2x2x64xf32> -> vector<2x8x64xf32>
    %7 = vector.shape_cast %6 : vector<2x8x64xf32> to vector<16x64xf32>
    %c0_5 = arith.constant 0 : index
    %c0_6 = arith.constant 0 : index
    %8 = vector.load %arg3[%c0_5, %c0_6] : memref<16x64xf32, #tpu.memory_space<vmem>>, vector<16x64xf32>
    tpu.vector_store %arg3[%c0_5, %c0_6], %7 {strides = array<i32>} : memref<16x64xf32, #tpu.memory_space<vmem>>, vector<16x64xf32>,
    return
  }
  func.func @transform_0(%arg0: i32) -> (i32, i32) {
    %c0_i32 = arith.constant 0 : i32
    %c0_i32_0 = arith.constant 0 : i32
    return %arg0, %c0_i32 : i32, i32
  }
  func.func @transform_1(%arg0: i32) -> (i32, i32) {
    %c0_i32 = arith.constant 0 : i32
    %c0_i32_0 = arith.constant 0 : i32
    %c0_i32_1 = arith.constant 0 : i32
    return %c0_i32, %c0_i32_0 : i32, i32
  }
  func.func @transform_2(%arg0: i32) -> (i32, i32) {
    %c0_i32 = arith.constant 0 : i32
    %c0_i32_0 = arith.constant 0 : i32
    return %arg0, %c0_i32 : i32, i32
  }
}

</mosaic_0001>

<bundles_post_ra>
// kernel: lambda_layer.1
= control target key start
LH: loop header
LB: loop body
LE: loop exit
PB: predicated region body
PF: predicated region fallthrough
CT: control target
= control target key end

     0   :  { %vm913_vm0 = vcmask 1041408   ;;  %vm916_vm1 = vcmask 1045504   ;;  %vm919_vm2 = vcmask 523264   ;;  %s1861_s1 = inlined_call_operand.vmem [shape: f32[256,64], index: 1, kind: input, shape index: {}]   ;;  %s1862_s0 = inlined_call_operand.vmem [shape: f32[8,256], index: 0, kind: input, shape index: {}]   ;;  %s1863_s2 = inlined_call_operand.vmem [shape: f32[16,64], index: 2, kind: output, shape index: {}]  }
   0x1   :  { %v44_v0 = vld [vmem:[%s1861_s1 + $0xf8] sm:$0xff]  ;;  %v43_v2 = vld [vmem:[%s1861_s1 + $0xf0] sm:$0xff]  ;;  %v42_v7 = vld [vmem:[%s1861_s1 + $0xe8] sm:$0xff] }
   0x2   :  { %v28_v1 = vld [vmem:[%s1861_s1 + $0x78] sm:$0xff]  ;;  %v1160_v3 = vand.u32 4294901760, %v44_v0  ;;  %v1164_v5 = vand.u32 4294901760, %v43_v2  ;;  %v27_v6 = vld [vmem:[%s1861_s1 + $0x70] sm:$0xff]  ;;  %v26_v8 = vld [vmem:[%s1861_s1 + $0x68] sm:$0xff]  ;;  %v1177_v10 = vand.u32 4294901760, %v42_v7 }
   0x3   :  { %v1162_v4 = vand.u32 4294901760, %v28_v1  ;;  %v1175_v9 = vand.u32 4294901760, %v27_v6  ;;  %v1179_v11 = vand.u32 4294901760, %v26_v8  ;;  %v41_v12 = vld [vmem:[%s1861_s1 + $0xe0] sm:$0xff]  ;;  %v40_v14 = vld [vmem:[%s1861_s1 + $0xd8] sm:$0xff]  ;;  %v1208_v20 = vld [vmem:[%s1861_s1 + $0xd0] sm:$0xff] }
   0x4   :  { %v25_v13 = vld [vmem:[%s1861_s1 + $0x60] sm:$0xff]  ;;  %926 = vmatprep.subr.mxu0 %v1160_v3  ;;  %v1191_v15 = vand.u32 4294901760, %v41_v12  ;;  %v1195_v17 = vand.u32 4294901760, %v40_v14  ;;  %v1198_v18 = vsub.f32 %v44_v0, %v1160_v3  ;;  %v1203_v19 = vld [vmem:[%s1861_s1 + $0x58] sm:$0xff]  ;;  %v1213_v21 = vld [vmem:[%s1861_s1 + $0x50] sm:$0xff]  ;;  %v1223_v24 = vand.u32 4294901760, %v1208_v20 }
   0x5   :  { %v1193_v16 = vand.u32 4294901760, %v25_v13  ;;  %927 = vmatpush3.msra.mxu0 %v1162_v4  ;;  %v1217_v22 = vand.u32 4294901760, %v1203_v19  ;;  %v1220_v23 = vsub.f32 %v28_v1, %v1162_v4  ;;  %v1226_v25 = vsub.f32 %v43_v2, %v1164_v5  ;;  %v1231_v26 = vld [vmem:[%s1861_s1 + $0xc8] sm:$0xff]  ;;  %v1241_v28 = vld [vmem:[%s1861_s1 + $0xc0] sm:$0xff]  ;;  %v1293_v46 = vld [vmem:[%s1861_s1 + $0xb8] sm:$0xff] }
   0x6   :  { %v1236_v27 = vld [vmem:[%s1861_s1 + $0x48] sm:$0xff]  ;;  %928 = vmatprep.subr.mxu0 %v1164_v5  ;;  %v1877_v29 = vand.u32 4294901760, %v1198_v18  ;;  %v1246_v30 = vand.u32 4294901760, %v1213_v21  ;;  %v1249_v31 = vsub.f32 %v27_v6, %v1175_v9  ;;  %v1252_v32 = vand.u32 4294901760, %v1231_v26  ;;  %v1266_v37 = vld [vmem:[%s1861_s1 + $0x40] sm:$0xff]  ;;  %v1306_v51 = vld [vmem:[%s1861_s1 + $0x38] sm:$0xff] }
   0x7   :  { %929 = vmatpush3.msra.mxu0 %v1175_v9  ;;  %v1876_v33 = vand.u32 4294901760, %v1220_v23  ;;  %v1874_v34 = vand.u32 4294901760, %v1226_v25  ;;  %v1258_v35 = vsub.f32 %v42_v7, %v1177_v10  ;;  %v1261_v36 = vand.u32 4294901760, %v1236_v27  ;;  %v1316_v56 = vld [vmem:[%s1861_s1 + $0xb0] sm:$0xff]  ;;  %v1346_v2 = vld [vmem:[%s1861_s1 + $0xa8] sm:$0xff] }
   0x8   :  { %1933 = vst [vmem:[#allocation2_spill] sm:$0xff] %v1246_v30  ;;  %1934 = vst [vmem:[#allocation3_spill] sm:$0xff] %v1252_v32  ;;  %930 = vmatprep.subr.mxu0 %v1177_v10  ;;  %v273_v38 = vsub.f32 %v1198_v18, %v1877_v29  ;;  %v1873_v39 = vand.u32 4294901760, %v1249_v31  ;;  %v1274_v40 = vsub.f32 %v26_v8, %v1179_v11  ;;  %v1277_v41 = vand.u32 4294901760, %v1241_v28  ;;  %v1331_v61 = vld [vmem:[%s1861_s1 + $0x30] sm:$0xff] }
   0x9   :  { %1935 = vst [vmem:[#allocation4_spill] sm:$0xff] %v1261_v36  ;;  %931 = vmatpush3.msra.mxu0 %v1179_v11  ;;  %v161_v42 = vsub.f32 %v1220_v23, %v1876_v33  ;;  %v280_v43 = vsub.f32 %v1226_v25, %v1874_v34  ;;  %v1871_v44 = vand.u32 4294901760, %v1258_v35  ;;  %v1288_v45 = vsub.f32 %v41_v12, %v1191_v15  ;;  %v1482_v33 = vld [vmem:[%s1861_s1 + $0x88] sm:$0xff] }
   0xa   :  { %1936 = vst [vmem:[#allocation5_spill] sm:$0xff] %v1277_v41  ;;  %932 = vmatprep.subr.mxu0 %v1191_v15  ;;  %v274_v47 = vand.u32 4294901760, %v273_v38  ;;  %v168_v48 = vsub.f32 %v1249_v31, %v1873_v39  ;;  %v1869_v49 = vand.u32 4294901760, %v1274_v40  ;;  %v1301_v50 = vand.u32 4294901760, %v1266_v37 }
   0xb   :  { %933 = vmatpush3.msra.mxu0 %v1193_v16  ;;  %v162_v52 = vand.u32 4294901760, %v161_v42  ;;  %v281_v53 = vand.u32 4294901760, %v280_v43  ;;  %v287_v54 = vsub.f32 %v1258_v35, %v1871_v44  ;;  %v1868_v55 = vand.u32 4294901760, %v1288_v45  ;;  %v1455_v44 = vld [vmem:[%s1861_s1 + $0x90] sm:$0xff] }
   0xc   :  { %1937 = vst [vmem:[#allocation6_spill] sm:$0xff] %v1301_v50  ;;  %934 = vmatprep.subr.mxu0 %v1195_v17  ;;  %961 = vmatprep.subr.mxu1 %v274_v47  ;;  %v169_v57 = vand.u32 4294901760, %v168_v48  ;;  %v175_v58 = vsub.f32 %v1274_v40, %v1869_v49  ;;  %v1323_v59 = vsub.f32 %v25_v13, %v1193_v16  ;;  %v1326_v60 = vand.u32 4294901760, %v1293_v46  ;;  %v1360_v13 = vld [vmem:[%s1861_s1 + $0x28] sm:$0xff]  ;;  %v1439_v49 = vld [vmem:[%s1861_s1 + $0x18] sm:$0xff] }
   0xd   :  { %935 = vmatpush3.msra.mxu0 %v1217_v22  ;;  %962 = vmatpush3.msra.mxu1 %v162_v52  ;;  %v288_v62 = vand.u32 4294901760, %v287_v54  ;;  %v294_v63 = vsub.f32 %v1288_v45, %v1868_v55  ;;  %v1338_v0 = vsub.f32 %v40_v14, %v1195_v17  ;;  %v1341_v1 = vand.u32 4294901760, %v1306_v51 }
   0xe   :  { %1938 = vst [vmem:[#allocation7_spill] sm:$0xff] %v1326_v60  ;;  %936 = vmatprep.subr.mxu0 %v1223_v24  ;;  %963 = vmatprep.subr.mxu1 %v281_v53  ;;  %v176_v6 = vand.u32 4294901760, %v175_v58  ;;  %v1866_v7 = vand.u32 4294901760, %v1323_v59  ;;  %v1352_v8 = vsub.f32 %v1203_v19, %v1217_v22  ;;  %v1355_v12 = vand.u32 4294901760, %v1316_v56 }
   0xf   :  { %1939 = vst [vmem:[#allocation8_spill] sm:$0xff] %v1341_v1  ;;  %937 = vmatpush3.msra.mxu0 %v1246_v30  ;;  %964 = vmatpush3.msra.mxu1 %v169_v57  ;;  %v295_v14 = vand.u32 4294901760, %v294_v63  ;;  %v1864_v38 = vand.u32 4294901760, %v1338_v0  ;;  %v1366_v42 = vsub.f32 %v1208_v20, %v1223_v24  ;;  %v1369_v19 = vand.u32 4294901760, %v1331_v61  ;;  %v1386_v20 = vld [vmem:[%s1861_s1 + $0xa0] sm:$0xff] }
  0x10   :  { %1940 = vst [vmem:[#allocation9_spill] sm:$0xff] %v1355_v12  ;;  %938 = vmatprep.subr.mxu0 %v1252_v32  ;;  %965 = vmatprep.subr.mxu1 %v288_v62  ;;  %v182_v43 = vsub.f32 %v1323_v59, %v1866_v7  ;;  %v1865_v47 = vand.u32 4294901760, %v1352_v8  ;;  %v1378_v48 = vsub.f32 %v1213_v21, %v1246_v30  ;;  %v1381_v52 = vand.u32 4294901760, %v1346_v2 }
  0x11   :  { %1941 = vst [vmem:[#allocation10_spill] sm:$0xff] %v1369_v19  ;;  %939 = vmatpush3.msra.mxu0 %v1261_v36  ;;  %966 = vmatpush3.msra.mxu1 %v176_v6  ;;  %v301_v53 = vsub.f32 %v1338_v0, %v1864_v38  ;;  %v1867_v54 = vand.u32 4294901760, %v1366_v42  ;;  %v1395_v21 = vsub.f32 %v1231_v26, %v1252_v32  ;;  %v1398_v57 = vand.u32 4294901760, %v1360_v13  ;;  %v1412_v26 = vld [vmem:[%s1861_s1 + $0x20] sm:$0xff] }
  0x12   :  { %1942 = vst [vmem:[#allocation11_spill] sm:$0xff] %v1381_v52  ;;  %940 = vmatprep.subr.mxu0 %v1277_v41  ;;  %967 = vmatprep.subr.mxu1 %v295_v14  ;;  %v183_v58 = vand.u32 4294901760, %v182_v43  ;;  %v189_v62 = vsub.f32 %v1352_v8, %v1865_v47  ;;  %v1870_v63 = vand.u32 4294901760, %v1378_v48  ;;  %v1407_v6 = vsub.f32 %v1236_v27, %v1261_v36  ;;  %v1425_v27 = vld [vmem:[%s1861_s1 + $0x98] sm:$0xff] }
  0x13   :  { %1943 = vst [vmem:[#allocation12_spill] sm:$0xff] %v1398_v57  ;;  %941 = vmatpush3.msra.mxu0 %v1301_v50  ;;  %v302_v38 = vand.u32 4294901760, %v301_v53  ;;  %v308_v14 = vsub.f32 %v1366_v42, %v1867_v54  ;;  %v1872_v43 = vand.u32 4294901760, %v1395_v21  ;;  %v1420_v47 = vand.u32 4294901760, %v1386_v20 }
  0x14   :  { %968 = vmatpush3.msra.mxu1 %v183_v58  ;;  %942 = vmatprep.subr.mxu0 %v1326_v60  ;;  %v190_v7 = vand.u32 4294901760, %v189_v62  ;;  %v196_v53 = vsub.f32 %v1378_v48, %v1870_v63  ;;  %v1875_v54 = vand.u32 4294901760, %v1407_v6  ;;  %v1434_v55 = vsub.f32 %v1241_v28, %v1277_v41  ;;  %v11_v41 = vld [vmem:[%s1862_s0] sm:$0xff] }
  0x15   :  { %1944 = vst [vmem:[#allocation13_spill] sm:$0xff] %v1420_v47  ;;  %969 = vmatprep.subr.mxu1 %v302_v38  ;;  %943 = vmatpush3.msra.mxu0 %v1341_v1  ;;  %v309_v58 = vand.u32 4294901760, %v308_v14  ;;  %v315_v62 = vsub.f32 %v1395_v21, %v1872_v43  ;;  %v1446_v63 = vand.u32 4294901760, %v1412_v26  ;;  %v1450_v28 = vsub.f32 %v1266_v37, %v1301_v50  ;;  %v1468_v37 = vld [vmem:[%s1861_s1 + $0x10] sm:$0xff] }
  0x16   :  { %970 = vmatpush3.msra.mxu1 %v190_v7  ;;  %944 = vmatprep.subr.mxu0 %v1355_v12  ;;  %v197_v38 = vand.u32 4294901760, %v196_v53  ;;  %v203_v14 = vsub.f32 %v1407_v6, %v1875_v54  ;;  %v1880_v43 = vand.u32 4294901760, %v1434_v55  ;;  %v1463_v39 = vand.u32 4294901760, %v1425_v27 }
  0x17   :  { %1945 = vst [vmem:[#allocation14_spill] sm:$0xff] %v1446_v63  ;;  %971 = vmatprep.subr.mxu1 %v309_v58  ;;  %945 = vmatpush3.msra.mxu0 %v1369_v19  ;;  %v316_v7 = vand.u32 4294901760, %v315_v62  ;;  %v1881_v53 = vand.u32 4294901760, %v1450_v28  ;;  %v1474_v34 = vsub.f32 %v1293_v46, %v1326_v60  ;;  %v1477_v54 = vand.u32 4294901760, %v1439_v49 }
  0x18   :  { %972 = vmatpush3.msra.mxu1 %v197_v38  ;;  %946 = vmatprep.subr.mxu0 %v1381_v52  ;;  %v204_v58 = vand.u32 4294901760, %v203_v14  ;;  %v322_v62 = vsub.f32 %v1434_v55, %v1880_v43  ;;  %v1490_v46 = vsub.f32 %v1306_v51, %v1341_v1  ;;  %v1493_v29 = vand.u32 4294901760, %v1455_v44  ;;  %v1510_v51 = vld [vmem:[%s1861_s1 + $0x8] sm:$0xff] }
  0x19   :  { %1946 = vst [vmem:[#allocation15_spill] sm:$0xff] %v1477_v54  ;;  %973 = vmatprep.subr.mxu1 %v316_v7  ;;  %947 = vmatpush3.msra.mxu0 %v1398_v57  ;;  %v210_v38 = vsub.f32 %v1450_v28, %v1881_v53  ;;  %v1502_v60 = vsub.f32 %v1316_v56, %v1355_v12  ;;  %v1505_v43 = vand.u32 4294901760, %v1468_v37  ;;  %v1519_v56 = vand.u32 4294901760, %v1482_v33  ;;  %v1524_v12 = vld [vmem:[%s1861_s1 + $0x80] sm:$0xff] }
  0x1a   :  { %1947 = vst [vmem:[#allocation16_spill] sm:$0xff] %v1493_v29  ;;  %974 = vmatpush3.msra.mxu1 %v204_v58  ;;  %948 = vmatprep.subr.mxu0 %v1420_v47  ;;  %v323_v7 = vand.u32 4294901760, %v322_v62  ;;  %v1516_v14 = vsub.f32 %v1331_v61, %v1369_v19  ;;  %v1951_v1 = vand.u32 4294901760, %v1474_v34  ;;  %v1533_v61 = vsub.f32 %v1346_v2, %v1381_v52  ;;  %v1550_v2 = vld [vmem:[%s1861_s1] sm:$0xff] }
  0x1b   :  { %1948 = vst [vmem:[#allocation17_spill] sm:$0xff] %v1505_v43  ;;  %1950 = vst [vmem:[#allocation19_spill] sm:$0xff] %v1519_v56  ;;  %949 = vmatpush3.msra.mxu0 %v1446_v63  ;;  %v211_v58 = vand.u32 4294901760, %v210_v38  ;;  %v1898_v53 = vand.u32 4294901760, %v1502_v60  ;;  %v1953_v19 = vand.u32 4294901760, %v1490_v46  ;;  %v1541_v38 = vand.u32 4294901760, %v1510_v51 }
  0x1c   :  { %1949 = vst [vmem:[#allocation18_spill] sm:$0xff] %v1516_v14  ;;  %v329_v62 = vsub.f32 %v1474_v34, %v1951_v1  ;;  %1952 = vst [vmem:[#allocation20_spill] sm:$0xff] %v1533_v61  ;;  %975 = vmatprep.subr.mxu1 %v323_v7  ;;  %950 = vmatprep.subr.mxu0 %v1463_v39  ;;  %v1545_v1 = vsub.f32 %v1360_v13, %v1398_v57  ;;  %v1558_v52 = vand.u32 4294901760, %v1524_v12  ;;  %v12_v13 = vld [vmem:[%s1862_s0 + $0x8] sm:$0xff] }
  0x1d   :  { %v217_v50 = vsub.f32 %v1490_v46, %v1953_v19  ;;  %976 = vmatpush3.msra.mxu1 %v211_v58  ;;  %951 = vmatpush3.msra.mxu0 %v1477_v54  ;;  %v336_v19 = vsub.f32 %v1502_v60, %v1898_v53  ;;  %v1954_v58 = vand.u32 4294901760, %v1516_v14  ;;  %v1570_v53 = vsub.f32 %v1386_v20, %v1420_v47 }
  0x1e   :  { %v330_v7 = vand.u32 4294901760, %v329_v62  ;;  %952 = vmatprep.subr.mxu0 %v1493_v29  ;;  %v1584_v36 = vsub.f32 %v1412_v26, %v1446_v63  ;;  %v1595_v26 = vand.u32 4294901760, %v11_v41 }
  0x1f   :  { %v218_v57 = vand.u32 4294901760, %v217_v50  ;;  %v224_v62 = vsub.f32 %v1516_v14, %v1954_v58  ;;  %v337_v32 = vand.u32 4294901760, %v336_v19  ;;  %953 = vmatpush3.msra.mxu0 %v1505_v43  ;;  %v1955_v50 = vand.u32 4294901760, %v1533_v61 }
  0x20   :  { %977 = vmatprep.subr.mxu1 %v330_v7  ;;  %v1580_v58 = vand.u32 4294901760, %v1550_v2  ;;  %954 = vmatprep.subr.mxu0 %v1519_v56  ;;  %v1956_v7 = vand.u32 4294901760, %v1545_v1  ;;  %v1909_v47 = vand.u32 4294901760, %v1570_v53  ;;  %v1591_v14 = vand.u32 4294901760, %v12_v13  ;;  %1958 = vst [vmem:[#allocation22_spill] sm:$0xff] %v1595_v26 }
  0x21   :  { %v343_v30 = vsub.f32 %v1533_v61, %v1955_v50  ;;  %978 = vmatpush3.msra.mxu1 %v218_v57  ;;  %v225_v20 = vand.u32 4294901760, %v224_v62  ;;  %955 = vmatpush3.msra.mxu0 %v1541_v38  ;;  %v1910_v61 = vand.u32 4294901760, %v1584_v36  ;;  %v1599_v57 = vsub.f32 %v1425_v27, %v1463_v39 }
  0x22   :  { %v231_v19 = vsub.f32 %v1545_v1, %v1956_v7  ;;  %1957 = vst [vmem:[#allocation21_spill] sm:$0xff] %v1591_v14  ;;  %979 = vmatprep.subr.mxu1 %v337_v32  ;;  %956 = vmatprep.subr.mxu0 %v1558_v52  ;;  %v350_v7 = vsub.f32 %v1570_v53, %v1909_v47 }
  0x23   :  { %v344_v50 = vand.u32 4294901760, %v343_v30  ;;  %980 = vmatpush3.msra.mxu1 %v225_v20  ;;  %v1606_v30 = vsub.f32 %v12_v13, %v1591_v14  ;;  %v1610_v32 = vsub.f32 %v1439_v49, %v1477_v54  ;;  %957 = vmatpush3.msra.mxu0 %v1580_v58  ;;  %v238_v27 = vsub.f32 %v1584_v36, %v1910_v61 }
  0x24   :  { %v232_v62 = vand.u32 4294901760, %v231_v19  ;;  %v1618_v19 = vsub.f32 %v11_v41, %v1595_v26  ;;  %v1622_v13 = vsub.f32 %v1455_v44, %v1493_v29  ;;  %v351_v47 = vand.u32 4294901760, %v350_v7  ;;  %996 = vmatprep.subr.mxu0 %v1198_v18  ;;  %382 = vmatprep.mubr.f32.mxu1 %v1591_v14 }
  0x25   :  { %981 = vmatprep.subr.mxu1 %v344_v50  ;;  %v1915_v49 = vand.u32 4294901760, %v1606_v30  ;;  %v1918_v50 = vand.u32 4294901760, %v1610_v32  ;;  %v1629_v61 = vsub.f32 %v1468_v37, %v1505_v43  ;;  %v239_v20 = vand.u32 4294901760, %v238_v27 }
  0x26   :  { %982 = vmatpush3.msra.mxu1 %v232_v62  ;;  %v1959_v41 = vand.u32 4294901760, %v1599_v57  ;;  %v1960_v62 = vand.u32 4294901760, %v1618_v19  ;;  %v1961_v14 = vand.u32 4294901760, %v1622_v13  ;;  %v1656_v43 = vsub.f32 %v1510_v51, %v1541_v38 }
  0x27   :  { %983 = vmatprep.subr.mxu1 %v351_v47  ;;  %v144_v7 = vsub.f32 %v1606_v30, %v1915_v49  ;;  %v245_v37 = vsub.f32 %v1610_v32, %v1918_v50  ;;  %v1963_v29 = vand.u32 4294901760, %v1629_v61 }
  0x28   :  { %v357_v54 = vsub.f32 %v1599_v57, %v1959_v41  ;;  %v1646_v41 = vsub.f32 %v1482_v33, %v1519_v56  ;;  %984 = vmatpush3.msra.mxu1 %v239_v20  ;;  %v150_v47 = vsub.f32 %v1618_v19, %v1960_v62  ;;  %v364_v49 = vsub.f32 %v1622_v13, %v1961_v14 }
  0x29   :  { %1962 = vst [vmem:[#allocation23_spill] sm:$0xff] %v1656_v43  ;;  %v145_v50 = vand.u32 4294901760, %v144_v7  ;;  %v246_v27 = vand.u32 4294901760, %v245_v37  ;;  %v252_v33 = vsub.f32 %v1629_v61, %v1963_v29  ;;  %v1925_v62 = vand.u32 4294901760, %v1656_v43 }
  0x2a   :  { %v358_v44 = vand.u32 4294901760, %v357_v54  ;;  %v1926_v54 = vand.u32 4294901760, %v1646_v41  ;;  %v151_v20 = vand.u32 4294901760, %v150_v47  ;;  %v365_v56 = vand.u32 4294901760, %v364_v49 }
  0x2b   :  { %v1665_v14 = vsub.f32 %v1524_v12, %v1558_v52  ;;  %146 = vmatprep.mubr.f32.mxu0 %v145_v50  ;;  %v253_v51 = vand.u32 4294901760, %v252_v33  ;;  %v1672_v29 = vsub.f32 %v1550_v2, %v1580_v58  ;;  %v259_v49 = vsub.f32 %v1656_v43, %v1925_v62  ;;  %v1966_v33 = vld [vmem:[#allocation18_spill] sm:$0xff]  ;;  %v1979_v62 = vld [vmem:[#allocation13_spill] sm:$0xff] }
  0x2c   :  { %985 = vmatprep.subr.mxu1 %v358_v44  ;;  %v371_v7 = vsub.f32 %v1646_v41, %v1926_v54  ;;  %152 = vmatmul.mubr.f32.vlgmr.msra.gmra.mxu0 %v151_v20  ;;  %v1967_v20 = vld [vmem:[#allocation2_spill] sm:$0xff]  ;;  %v1980_v54 = vand.u32 4294901760, %v1198_v18  ;;  %v1988_v18 = vand.u32 4294901760, %v1258_v35 }
  0x2d   :  { %1964 = vst [vmem:[#allocation24_spill] sm:$0xff] %v1665_v14  ;;  %986 = vmatpush3.msra.mxu1 %v246_v27  ;;  %1965 = vst [vmem:[#allocation25_spill] sm:$0xff] %v1672_v29  ;;  %v1924_v12 = vand.u32 4294901760, %v1665_v14  ;;  %997 = vmatpush3.msra.mxu0 %v1220_v23  ;;  %v1923_v44 = vand.u32 4294901760, %v1672_v29  ;;  %v260_v37 = vand.u32 4294901760, %v259_v49  ;;  %v1970_v49 = vld [vmem:[#allocation4_spill] sm:$0xff] }
  0x2e   :  { %987 = vmatprep.subr.mxu1 %v365_v56  ;;  %v372_v50 = vand.u32 4294901760, %v371_v7  ;;  %998 = vmatprep.subr.mxu0 %v1226_v25  ;;  %v1969_v7 = vld [vmem:[#allocation3_spill] sm:$0xff] }
  0x2f   :  { %988 = vmatpush3.msra.mxu1 %v253_v51  ;;  %v378_v2 = vsub.f32 %v1665_v14, %v1924_v12  ;;  %519 = vmatprep.mubr.f32.mxu0 %v1606_v30  ;;  %v266_v56 = vsub.f32 %v1672_v29, %v1923_v44  ;;  %v1968_v51 = vld [vmem:[#allocation20_spill] sm:$0xff]  ;;  %v1977_v44 = vld [vmem:[#allocation11_spill] sm:$0xff] }
  0x30   :  { %999 = vmatpush3.msra.mxu0 %v1249_v31  ;;  %989 = vmatprep.subr.mxu1 %v372_v50  ;;  %v1971_v50 = vld [vmem:[#allocation5_spill] sm:$0xff]  ;;  %v1978_v12 = vld [vmem:[#allocation12_spill] sm:$0xff] }
  0x31   :  { %1000 = vmatprep.subr.mxu0 %v1258_v35  ;;  %990 = vmatpush3.msra.mxu1 %v260_v37  ;;  %v379_v27 = vand.u32 4294901760, %v378_v2  ;;  %v267_v47 = vand.u32 4294901760, %v266_v56  ;;  %v1972_v37 = vld [vmem:[#allocation6_spill] sm:$0xff]  ;;  %v1973_v2 = vld [vmem:[#allocation7_spill] sm:$0xff]  ;;  %v1974_v56 = vld [vmem:[#allocation8_spill] sm:$0xff]  ;;  %v1993_v35 = vand.u32 4294901760, %v1618_v19 }
  0x32   :  { %1001 = vmatpush3.msra.mxu0 %v1274_v40 }
  0x33   :  { %991 = vmatprep.subr.mxu1 %v379_v27  ;;  %1002 = vmatprep.subr.mxu0 %v1288_v45  ;;  %v1975_v27 = vld [vmem:[#allocation9_spill] sm:$0xff] }
  0x34   :  { %992 = vmatpush3.msra.mxu1 %v267_v47  ;;  %1003 = vmatpush3.msra.mxu0 %v1323_v59  ;;  %v1976_v47 = vld [vmem:[#allocation10_spill] sm:$0xff] }
  0x35   :  { %384 = vmatmul.mubr.f32.vlgmr.msra.gmra.mxu1 %v1595_v26  ;;  %1004 = vmatprep.subr.mxu0 %v1338_v0  ;;  %v1981_v26 = vld [vmem:[#allocation15_spill] sm:$0xff] }
  0x36   :  { %1031 = vmatprep.subr.mxu1 %v1160_v3  ;;  %1005 = vmatpush3.msra.mxu0 %v1352_v8 }
  0x37   :  { %1032 = vmatpush3.msra.mxu1 %v1162_v4  ;;  %1006 = vmatprep.subr.mxu0 %v1366_v42 }
  0x38   :  { %1033 = vmatprep.subr.mxu1 %v1164_v5  ;;  %1007 = vmatpush3.msra.mxu0 %v1378_v48 }
  0x39   :  { %1034 = vmatpush3.msra.mxu1 %v1175_v9  ;;  %1008 = vmatprep.subr.mxu0 %v1395_v21 }
  0x3a   :  { %1035 = vmatprep.subr.mxu1 %v1177_v10  ;;  %1009 = vmatpush3.msra.mxu0 %v1407_v6 }
  0x3b   :  { %1036 = vmatpush3.msra.mxu1 %v1179_v11  ;;  %1010 = vmatprep.subr.mxu0 %v1434_v55 }
  0x3c   :  { %1037 = vmatprep.subr.mxu1 %v1191_v15  ;;  %1011 = vmatpush3.msra.mxu0 %v1450_v28 }
  0x3d   :  { %1038 = vmatpush3.msra.mxu1 %v1193_v16  ;;  %1012 = vmatprep.subr.mxu0 %v1474_v34 }
  0x3e   :  { %1039 = vmatprep.subr.mxu1 %v1195_v17  ;;  %1013 = vmatpush3.msra.mxu0 %v1490_v46 }
  0x3f   :  { %1040 = vmatpush3.msra.mxu1 %v1217_v22  ;;  %1014 = vmatprep.subr.mxu0 %v1502_v60 }
  0x40   :  { %1041 = vmatprep.subr.mxu1 %v1223_v24  ;;  %1015 = vmatpush3.msra.mxu0 %v1966_v33 }
  0x41   :  { %1042 = vmatpush3.msra.mxu1 %v1967_v20  ;;  %1016 = vmatprep.subr.mxu0 %v1968_v51 }
  0x42   :  { %1043 = vmatprep.subr.mxu1 %v1969_v7  ;;  %1017 = vmatpush3.msra.mxu0 %v1545_v1 }
  0x43   :  { %1044 = vmatpush3.msra.mxu1 %v1970_v49  ;;  %1018 = vmatprep.subr.mxu0 %v1570_v53 }
  0x44   :  { %1045 = vmatprep.subr.mxu1 %v1971_v50  ;;  %1019 = vmatpush3.msra.mxu0 %v1584_v36 }
  0x45   :  { %1046 = vmatpush3.msra.mxu1 %v1972_v37  ;;  %1020 = vmatprep.subr.mxu0 %v1599_v57 }
  0x46   :  { %1047 = vmatprep.subr.mxu1 %v1973_v2  ;;  %1021 = vmatpush3.msra.mxu0 %v1610_v32 }
  0x47   :  { %1048 = vmatpush3.msra.mxu1 %v1974_v56  ;;  %1022 = vmatprep.subr.mxu0 %v1622_v13 }
  0x48   :  { %1049 = vmatprep.subr.mxu1 %v1975_v27  ;;  %1023 = vmatpush3.msra.mxu0 %v1629_v61 }
  0x49   :  { %1050 = vmatpush3.msra.mxu1 %v1976_v47  ;;  %1024 = vmatprep.subr.mxu0 %v1646_v41 }
  0x4a   :  { %1051 = vmatprep.subr.mxu1 %v1977_v44  ;;  %1025 = vmatpush3.msra.mxu0 %v1656_v43  ;;  %v1982_v43 = vand.u32 4294901760, %v1220_v23  ;;  %v1989_v23 = vand.u32 4294901760, %v1274_v40  ;;  %v1995_v40 = vand.u32 4294901760, %v1352_v8  ;;  %v2014_v8 = vand.u32 4294901760, %v1646_v41 }
  0x4b   :  { %1052 = vmatpush3.msra.mxu1 %v1978_v12  ;;  %1026 = vmatprep.subr.mxu0 %v1665_v14  ;;  %v1983_v12 = vld [vmem:[#allocation16_spill] sm:$0xff]  ;;  %v1987_v14 = vld [vmem:[#allocation19_spill] sm:$0xff] }
  0x4c   :  { %1053 = vmatprep.subr.mxu1 %v1979_v62  ;;  %1027 = vmatpush3.msra.mxu0 %v1672_v29  ;;  %v1984_v62 = vand.u32 4294901760, %v1226_v25  ;;  %v1985_v29 = vld [vmem:[#allocation17_spill] sm:$0xff]  ;;  %v1990_v25 = vand.u32 4294901760, %v1288_v45  ;;  %v1996_v45 = vand.u32 4294901760, %v1366_v42  ;;  %v2015_v42 = vld [vmem:[#allocation23_spill] sm:$0xff] }
  0x4d   :  { %1054 = vmatpush3.msra.mxu1 %v1446_v63  ;;  %522 = vmatmul.mubr.f32.vlgmr.msra.gmra.mxu0 %v1618_v19  ;;  %v1986_v63 = vand.u32 4294901760, %v1249_v31  ;;  %v1991_v31 = vand.u32 4294901760, %v1606_v30  ;;  %v2025_v30 = vld [vmem:[#allocation22_spill] sm:$0xff] }
  0x4e   :  { %1055 = vmatprep.subr.mxu1 %v1463_v39  ;;  %1066 = vmatprep.subr.mxu0 %v1980_v54 }
  0x4f   :  { %1056 = vmatpush3.msra.mxu1 %v1981_v26  ;;  %1067 = vmatpush3.msra.mxu0 %v1982_v43  ;;  %v1994_v43 = vand.u32 4294901760, %v1338_v0  ;;  %v1998_v0 = vand.u32 4294901760, %v1395_v21  ;;  %v2017_v21 = vld [vmem:[#allocation12_spill] sm:$0xff] }
  0x50   :  { %1057 = vmatprep.subr.mxu1 %v1983_v12  ;;  %1068 = vmatprep.subr.mxu0 %v1984_v62 }
  0x51   :  { %1058 = vmatpush3.msra.mxu1 %v1985_v29  ;;  %1069 = vmatpush3.msra.mxu0 %v1986_v63  ;;  %v1992_v63 = vand.u32 4294901760, %v1323_v59  ;;  %v1997_v59 = vand.u32 4294901760, %v1378_v48  ;;  %v2016_v48 = vand.u32 4294901760, %v2015_v42 }
  0x52   :  { %1059 = vmatprep.subr.mxu1 %v1987_v14  ;;  %1070 = vmatprep.subr.mxu0 %v1988_v18 }
  0x53   :  { %1060 = vmatpush3.msra.mxu1 %v1541_v38  ;;  %1071 = vmatpush3.msra.mxu0 %v1989_v23 }
  0x54   :  { %1061 = vmatprep.subr.mxu1 %v1558_v52  ;;  %1072 = vmatprep.subr.mxu0 %v1990_v25 }
  0x55   :  { %1062 = vmatpush3.msra.mxu1 %v1580_v58  ;;  %626 = vmatprep.mubr.f32.mxu1 %v1991_v31 }
  0x56   :  { %1073 = vmatpush3.msra.mxu0 %v1992_v63  ;;  %630 = vmatmul.mubr.f32.vlgmr.msra.gmra.mxu1 %v1993_v35 }
  0x57   :  { %1074 = vmatprep.subr.mxu0 %v1994_v43  ;;  %1101 = vmatprep.subr.mxu1 %v1160_v3  ;;  %v1999_v3 = vand.u32 4294901760, %v1407_v6  ;;  %v2018_v6 = vld [vmem:[#allocation24_spill] sm:$0xff] }
  0x58   :  { %1075 = vmatpush3.msra.mxu0 %v1995_v40  ;;  %1102 = vmatpush3.msra.mxu1 %v1162_v4  ;;  %v2000_v4 = vand.u32 4294901760, %v1434_v55  ;;  %v2011_v55 = vand.u32 4294901760, %v1610_v32 }
  0x59   :  { %1076 = vmatprep.subr.mxu0 %v1996_v45  ;;  %1103 = vmatprep.subr.mxu1 %v1164_v5  ;;  %v2001_v5 = vand.u32 4294901760, %v1450_v28  ;;  %v2019_v28 = vand.u32 4294901760, %v2018_v6 }
  0x5a   :  { %1077 = vmatpush3.msra.mxu0 %v1997_v59  ;;  %1104 = vmatpush3.msra.mxu1 %v1175_v9  ;;  %v2002_v9 = vand.u32 4294901760, %v1474_v34  ;;  %v2010_v34 = vand.u32 4294901760, %v1599_v57  ;;  %v2024_v57 = vld [vmem:[#allocation14_spill] sm:$0xff] }
  0x5b   :  { %1078 = vmatprep.subr.mxu0 %v1998_v0  ;;  %1105 = vmatprep.subr.mxu1 %v1177_v10  ;;  %v2003_v10 = vand.u32 4294901760, %v1490_v46  ;;  %v2021_v46 = vld [vmem:[#allocation25_spill] sm:$0xff] }
  0x5c   :  { %1079 = vmatpush3.msra.mxu0 %v1999_v3  ;;  %1106 = vmatpush3.msra.mxu1 %v1179_v11  ;;  %v2004_v11 = vand.u32 4294901760, %v1502_v60  ;;  %v2012_v60 = vand.u32 4294901760, %v1622_v13 }
  0x5d   :  { %1080 = vmatprep.subr.mxu0 %v2000_v4  ;;  %1107 = vmatprep.subr.mxu1 %v1191_v15  ;;  %v2005_v15 = vand.u32 4294901760, %v1966_v33 }
  0x5e   :  { %1081 = vmatpush3.msra.mxu0 %v2001_v5  ;;  %1108 = vmatpush3.msra.mxu1 %v1193_v16  ;;  %v2006_v16 = vand.u32 4294901760, %v1968_v51 }
  0x5f   :  { %1082 = vmatprep.subr.mxu0 %v2002_v9  ;;  %1109 = vmatprep.subr.mxu1 %v1195_v17  ;;  %v2007_v17 = vand.u32 4294901760, %v1545_v1  ;;  %v2023_v1 = vld [vmem:[#allocation21_spill] sm:$0xff] }
  0x60   :  { %1083 = vmatpush3.msra.mxu0 %v2003_v10  ;;  %1110 = vmatpush3.msra.mxu1 %v1217_v22  ;;  %v2008_v22 = vand.u32 4294901760, %v1570_v53  ;;  %v2020_v53 = vld [vmem:[#allocation13_spill] sm:$0xff] }
  0x61   :  { %1084 = vmatprep.subr.mxu0 %v2004_v11  ;;  %1111 = vmatprep.subr.mxu1 %v1223_v24  ;;  %v2009_v24 = vand.u32 4294901760, %v1584_v36  ;;  %v2013_v36 = vand.u32 4294901760, %v1629_v61  ;;  %v2022_v61 = vand.u32 4294901760, %v2021_v46 }
  0x62   :  { %1085 = vmatpush3.msra.mxu0 %v2005_v15  ;;  %1112 = vmatpush3.msra.mxu1 %v1967_v20 }
  0x63   :  { %1086 = vmatprep.subr.mxu0 %v2006_v16  ;;  %1113 = vmatprep.subr.mxu1 %v1969_v7 }
  0x64   :  { %1087 = vmatpush3.msra.mxu0 %v2007_v17  ;;  %1114 = vmatpush3.msra.mxu1 %v1970_v49 }
  0x65   :  { %1088 = vmatprep.subr.mxu0 %v2008_v22  ;;  %1115 = vmatprep.subr.mxu1 %v1971_v50 }
  0x66   :  { %1089 = vmatpush3.msra.mxu0 %v2009_v24  ;;  %1116 = vmatpush3.msra.mxu1 %v1972_v37 }
  0x67   :  { %1090 = vmatprep.subr.mxu0 %v2010_v34  ;;  %1117 = vmatprep.subr.mxu1 %v1973_v2 }
  0x68   :  { %1091 = vmatpush3.msra.mxu0 %v2011_v55  ;;  %1118 = vmatpush3.msra.mxu1 %v1974_v56 }
  0x69   :  { %1092 = vmatprep.subr.mxu0 %v2012_v60  ;;  %1119 = vmatprep.subr.mxu1 %v1975_v27 }
  0x6a   :  { %1093 = vmatpush3.msra.mxu0 %v2013_v36  ;;  %1120 = vmatpush3.msra.mxu1 %v1976_v47 }
  0x6b   :  { %1094 = vmatprep.subr.mxu0 %v2014_v8  ;;  %1121 = vmatprep.subr.mxu1 %v1977_v44 }
  0x6c   :  { %1095 = vmatpush3.msra.mxu0 %v2016_v48  ;;  %1122 = vmatpush3.msra.mxu1 %v2017_v21 }
  0x6d   :  { %1096 = vmatprep.subr.mxu0 %v2019_v28  ;;  %1123 = vmatprep.subr.mxu1 %v2020_v53 }
  0x6e   :  { %1097 = vmatpush3.msra.mxu0 %v2022_v61  ;;  %796 = vmatprep.mubr.f32.mxu0 %v2023_v1 }
  0x6f   :  { %1124 = vmatpush3.msra.mxu1 %v2024_v57  ;;  %798 = vmatmul.mubr.f32.vlgmr.msra.gmra.mxu0 %v2025_v30 }
  0x70   :  { %1125 = vmatprep.subr.mxu1 %v1463_v39  ;;  %900 = vmatprep.mubr.f32.mxu1 %v2023_v1 }
  0x71   :  { %1126 = vmatpush3.msra.mxu1 %v1981_v26 }
  0x72   :  { %1127 = vmatprep.subr.mxu1 %v1983_v12 }
  0x73   :  { %1128 = vmatpush3.msra.mxu1 %v1985_v29 }
  0x74   :  { %1129 = vmatprep.subr.mxu1 %v1987_v14 }
  0x75   :  { %1130 = vmatpush3.msra.mxu1 %v1541_v38 }
  0x76   :  { %1131 = vmatprep.subr.mxu1 %v1558_v52 }
  0x77   :  { %1132 = vmatpush3.msra.mxu1 %v1580_v58 }
  0x78   :  { %902 = vmatmul.mubr.f32.vlgmr.msra.gmra.mxu1 %v2025_v30 }
  0xec   :  { %v958_v32 = vpop.f32.mrf.mxu0 }
  0xee   :  { %v959_v39 = vpop.f32.mrf.mxu0 }
  0xef   :  { %v960_v44 = vadd.f32 %v959_v39, %v958_v32 }
  0xf5   :  { %v993_v19 = vpop.f32.mrf.mxu1 }
  0xf7   :  { %v994_v41 = vpop.f32.mrf.mxu1 }
  0xf8   :  { %v995_v12 = vadd.f32 %v994_v41, %v993_v19 }
  0xfa   :  { %v386_v38 = vadd.f32 %v995_v12, %v960_v44 }
 0x10d   :  { %v1028_v13 = vpop.f32.mrf.mxu0 }
 0x10f   :  { %v1029_v26 = vpop.f32.mrf.mxu0 }
 0x110   :  { %v1030_v14 = vadd.f32 %v1029_v26, %v1028_v13 }
 0x112   :  { %v524_v52 = vadd.f32 %v1030_v14, %v386_v38 }
 0x116   :  { %v1063_v54 = vpop.f32.mrf.mxu1 }
 0x118   :  { %v1064_v29 = vpop.f32.mrf.mxu1 }
 0x119   :  { %v1065_v20 = vadd.f32 %v1064_v29, %v1063_v54 }
 0x11b   :  { %v632_v7 = vadd.f32 %v1065_v20, %v524_v52 }
 0x12f   :  { %v1098_v62 = vpop.f32.mrf.mxu0 }
 0x131   :  { %v1099_v33 = vpop.f32.mrf.mxu0 }
 0x132   :  { %v1100_v51 = vadd.f32 %v1099_v33, %v1098_v62 }
 0x134   :  { %v800_v50 = vadd.f32 %v1100_v51, %v632_v7 }
 0x138   :  { %v1133_v58 = vpop.f32.mrf.mxu1 }
 0x13a   :  { %v1134_v49 = vpop.f32.mrf.mxu1 }
 0x13b   :  { %v1135_v37 = vadd.f32 %v1134_v49, %v1133_v58 }
 0x13d   :  { %v904_v2 = vadd.f32 %v1135_v37, %v800_v50 }
 0x13f   :  { %v908_v56 = vcombine.high %v904_v2, %v904_v2  ;;  %v909_v27 = vrot.slane %v904_v2, 6 }
 0x141   :  { %v910_v47 = vrot.slane %v908_v56, 6  ;;  %v914_v18 = vsel %vm913_vm0, 0.0, %v909_v27 }
 0x142   :  { %v917_v23 = vsel %vm916_vm1, %v914_v18, 0.0 }
 0x143   :  { %v915_v25 = vsel %vm913_vm0, 0.0, %v910_v47  ;;  %920 = vst.msk [vmem:[%s1863_s2] sm:$0xff] %vm919_vm2, %v917_v23 }
 0x144   :  { %v918_v31 = vsel %vm916_vm1, %v915_v25, 0.0 }
 0x145   :  { %921 = vst.msk [vmem:[%s1863_s2 + $0x8] sm:$0xff] %vm919_vm2, %v918_v31 }

</bundles_post_ra>
